<compile_context>
chip_gen: v7x
topology: tpu7x:2x2x1
jax: 0.10.0
libtpu: 0.0.40
codegen_flags: <defaults>
</compile_context>

<pallas_src>
import jax
import jax.numpy as jnp
from jax.experimental import pallas as pl
from jax.experimental.pallas import tpu as pltpu


def _dma_copy_kernel(x_ref, o_ref, copy_sem):
    # x_ref / o_ref are raw HBM refs (memory_space=pl.ANY).  One async copy
    # moves the whole (byte-identical) array HBM->HBM; no VMEM round trip.
    cp = pltpu.make_async_copy(x_ref, o_ref, copy_sem)
    cp.start()
    cp.wait()


def _pallas_identity_copy(x):
    """Byte-identical copy of `x` via a single direct HBM->HBM async DMA."""
    nbytes = x.size * jnp.dtype(x.dtype).itemsize
    return pl.pallas_call(
        _dma_copy_kernel,
        out_shape=jax.ShapeDtypeStruct(x.shape, x.dtype),
        in_specs=[pl.BlockSpec(memory_space=pl.ANY)],
        out_specs=pl.BlockSpec(memory_space=pl.ANY),
        scratch_shapes=[pltpu.SemaphoreType.DMA],
        cost_estimate=pl.CostEstimate(
            flops=0, transcendentals=0, bytes_accessed=2 * nbytes),
    )(x)


def im2video(x, time_dim: int = 2, use_kernel: bool = False):
    """Convert an image batch into a trivial (single-frame) video.

    Default path is metadata-only (fastest on every TPU generation).  Set
    use_kernel=True to materialize the result via the Pallas DMA kernel.
    """
    if x.ndim == 5:
        # Already a video — passthrough.
        return x
    if x.ndim != 4:
        raise ValueError(f"Dimension incorrect {x.shape}")

    # torch.unsqueeze(time_dim) semantics, including negative indices.
    out_ndim = x.ndim + 1
    td = time_dim + out_ndim if time_dim < 0 else time_dim
    if not (0 <= td < out_ndim):
        raise ValueError(f"Invalid time_dim {time_dim} for shape {x.shape}")
    out_shape = x.shape[:td] + (1,) + x.shape[td:]

    if not use_kernel:
        # Fastest path on all generations: metadata-only, zero HBM traffic.
        return jnp.expand_dims(x, td)

    # Kernel path: the unsqueeze is byte-identical to the input, so copy the
    # raw bytes with one HBM->HBM DMA and reshape (metadata-only) afterwards.
    y = _pallas_identity_copy(x)
    return y.reshape(out_shape)


if __name__ == "__main__":
    key = jax.random.PRNGKey(0)

    # 4-D image input: (N, C, H, W) -> Pallas DMA-copy kernel path.
    x4 = jax.random.normal(key, (2, 4, 16, 16), dtype=jnp.float32)
    y4 = jax.block_until_ready(im2video(x4, use_kernel=True))
    assert y4.shape == (2, 4, 1, 16, 16), y4.shape
    assert y4.dtype == x4.dtype
    assert jnp.array_equal(y4, jnp.expand_dims(x4, axis=2))

    # Non-default time_dim (torch.unsqueeze semantics), kernel path.
    y4b = jax.block_until_ready(im2video(x4, time_dim=1, use_kernel=True))
    assert y4b.shape == (2, 1, 4, 16, 16), y4b.shape
    assert jnp.array_equal(y4b, jnp.expand_dims(x4, axis=1))

    # Negative time_dim, kernel path.
    y4c = jax.block_until_ready(im2video(x4, time_dim=-3, use_kernel=True))
    assert y4c.shape == (2, 4, 1, 16, 16), y4c.shape
    assert jnp.array_equal(y4c, jnp.expand_dims(x4, axis=2))

    # Default metadata-only fast path matches the kernel path.
    y4d = jax.block_until_ready(im2video(x4))
    assert y4d.shape == y4.shape
    assert jnp.array_equal(y4d, y4)

    # 5-D video input: passthrough.
    x5 = jax.random.normal(jax.random.PRNGKey(1), (2, 4, 3, 16, 16),
                           dtype=jnp.float32)
    y5 = jax.block_until_ready(im2video(x5))
    assert y5.shape == x5.shape
    assert jnp.array_equal(y5, x5)

    print("KERNEL_OK")
</pallas_src>

<mosaic_0001>
module attributes {stable_mosaic.version = 11 : i64} {
  func.func @_dma_copy_kernel(%arg0: memref<2x4x16x16xf32, #tpu.memory_space<any>>, %arg1: memref<2x4x16x16xf32, #tpu.memory_space<any>>, %arg2: memref<!tpu.dma_semaphore, #tpu.memory_space<semaphore_mem>>) attributes {dimension_semantics = [], scalar_prefetch = 0 : i64, scratch_operands = 1 : i64, tpu.core_type = #tpu.core_type<tc>} {
    tpu.enqueue_dma source(%arg0 : memref<2x4x16x16xf32, #tpu.memory_space<any>>) target(%arg1 : memref<2x4x16x16xf32, #tpu.memory_space<any>>) target_semaphore(%arg2 : memref<!tpu.dma_semaphore, #tpu.memory_space<semaphore_mem>>)
    tpu.wait_dma2 semaphore(%arg2 : memref<!tpu.dma_semaphore, #tpu.memory_space<semaphore_mem>>) src(%arg0 : memref<2x4x16x16xf32, #tpu.memory_space<any>>) dst(%arg1 : memref<2x4x16x16xf32, #tpu.memory_space<any>>)
    return
  }
}

</mosaic_0001>

<bundles_post_ra>
// kernel: tpu_custom_call.1
= control target key start
LH: loop header
LB: loop body
LE: loop exit
PB: predicated region body
PF: predicated region fallthrough
CT: control target
= control target key end

     0   :  { %s36_s6 = smov [#allocation2]   ;;  %s37_s7 = smov [#allocation3]   ;;  %s55_s0 = inlined_call_operand.hbm [shape: f32[2,4,16,16], index: 0, kind: input, shape index: {}]   ;;  %s56_s1 = inlined_call_operand.hbm [shape: f32[2,4,16,16], index: 1, kind: output, shape index: {}]  }
   0x1   :  { %s38_s8 = smov 0  }
   0x2   :  { %18 = dma.general %s55_s0, 2048, %s56_s1, %s36_s6, %s37_s7, [#allocation4], %s38_s8, 0  }
   0x3   :  { %34 = dma.done.wait [#allocation2], 2048 }
   0x4   :  { %35 = vsyncadd [#allocation2], 4294965248 }
   0x5   :  { %24 = vsyncmov [#allocation2] }
   0x8   :  { %s25_s13 = vpop.sfrf %24 }
   0x9   :  { %p30_p0 = scmp.ne.s32.totalorder %s25_s13, 0 }
   0xb   :  { %29 = shalt.err (%p30_p0)  }

</bundles_post_ra>
